<compile_context>
chip_gen: v5e
topology: v5e:2x2
jax: 0.10.0
libtpu: 0.0.40
codegen_flags: <defaults>
</compile_context>

<pallas_src>
import jax
import jax.numpy as jnp
from jax.experimental import pallas as pl
from jax.experimental.pallas import tpu as pltpu


def fused_double_linear_kernel(wb_ref, x_ref, o_ref):
    # wb_ref: SMEM (2,)  -> [w, b] scalars of the Linear(1, 1) layer
    # x_ref:  VMEM (1, M) lane-dense input (the original, un-permuted x1)
    # o_ref:  VMEM (1, M) lane-dense output
    w = wb_ref[0]
    b = wb_ref[1]
    x = x_ref[...]
    # Two stacked Linear(1,1) applications: ((x*w + b)*w + b).
    # Pure VPU elementwise math — no MXU push/pop for a 2-element problem.
    o_ref[...] = (x * w + b) * w + b


def model_forward(x1, weight, bias):
    """Replicates Model.forward: permute(1, 0) then two Linear(1, 1) applications.

    The kernel computes on the lane-dense (1, M) row; the permute(1, 0) of a
    size-1 leading dim is realized as a zero-cost reshape of the result.
    """
    m = x1.shape[1]
    # Pack the two scalars into one SMEM input (single tiny DMA, no VMEM tiles).
    wb = jnp.concatenate([weight.reshape(-1), bias.reshape(-1)]).astype(jnp.float32)

    out_row = pl.pallas_call(
        fused_double_linear_kernel,
        out_shape=jax.ShapeDtypeStruct((1, m), jnp.float32),
        in_specs=[
            pl.BlockSpec(memory_space=pltpu.MemorySpace.SMEM),   # [w, b] scalars
            pl.BlockSpec(memory_space=pltpu.MemorySpace.VMEM),   # (1, M) row
        ],
        out_specs=pl.BlockSpec(memory_space=pltpu.MemorySpace.VMEM),
    )(wb, x1)

    # permute(1, 0) of the (1, M) row == reshape to (M, 1): free in XLA.
    return out_row.reshape(m, 1)


if __name__ == "__main__":
    key = jax.random.PRNGKey(0)
    k_x, k_w, k_b = jax.random.split(key, 3)

    # Input: matches torch.randn(1, 2)
    x1 = jax.random.normal(k_x, (1, 2), dtype=jnp.float32)

    # Deterministic Linear(1, 1) params (PyTorch default init: U(-1, 1) since fan_in=1)
    weight = jax.random.uniform(k_w, (1, 1), dtype=jnp.float32, minval=-1.0, maxval=1.0)
    bias = jax.random.uniform(k_b, (1,), dtype=jnp.float32, minval=-1.0, maxval=1.0)

    out = model_forward(x1, weight, bias)
    out = jax.block_until_ready(out)

    # Pure-JAX reference check (exactly the PyTorch forward semantics)
    v1 = x1.T
    ref = (v1 @ weight.T + bias) @ weight.T + bias
    assert out.shape == (2, 1)
    assert jnp.allclose(out, ref, atol=1e-5, rtol=1e-5)

    print("KERNEL_OK")
</pallas_src>

<mosaic_0001>
module attributes {stable_mosaic.version = 11 : i64} {
  func.func @fused_double_linear_kernel(%arg0: memref<2xf32, #tpu.memory_space<smem>>, %arg1: memref<1x2xf32, #tpu.memory_space<vmem>>, %arg2: memref<1x2xf32, #tpu.memory_space<vmem>>) attributes {dimension_semantics = [], scalar_prefetch = 0 : i64, scratch_operands = 0 : i64, tpu.core_type = #tpu.core_type<tc>} {
    %c0 = arith.constant 0 : index
    %0 = memref.load %arg0[%c0] : memref<2xf32, #tpu.memory_space<smem>>
    %c1 = arith.constant 1 : index
    %1 = memref.load %arg0[%c1] : memref<2xf32, #tpu.memory_space<smem>>
    %c0_0 = arith.constant 0 : index
    %c0_1 = arith.constant 0 : index
    %2 = vector.load %arg1[%c0_0, %c0_1] : memref<1x2xf32, #tpu.memory_space<vmem>>, vector<1x2xf32>
    %3 = vector.broadcast %0 : f32 to vector<1x2xf32>
    %4 = arith.mulf %2, %3 : vector<1x2xf32>
    %5 = vector.broadcast %1 : f32 to vector<1x2xf32>
    %6 = arith.addf %4, %5 : vector<1x2xf32>
    %7 = vector.broadcast %0 : f32 to vector<1x2xf32>
    %8 = arith.mulf %6, %7 : vector<1x2xf32>
    %9 = vector.broadcast %1 : f32 to vector<1x2xf32>
    %10 = arith.addf %8, %9 : vector<1x2xf32>
    %c0_2 = arith.constant 0 : index
    %c0_3 = arith.constant 0 : index
    %11 = vector.load %arg2[%c0_2, %c0_3] : memref<1x2xf32, #tpu.memory_space<vmem>>, vector<1x2xf32>
    tpu.vector_store %arg2[%c0_2, %c0_3], %10 {strides = array<i32>} : memref<1x2xf32, #tpu.memory_space<vmem>>, vector<1x2xf32>,
    return
  }
}

</mosaic_0001>

<bundles_post_ra>
// kernel: tpu_custom_call.1
= control target key start
LH: loop header
LB: loop body
LE: loop exit
PB: predicated region body
PF: predicated region fallthrough
CT: control target
= control target key end

     0   :  { %7 = vsyncpa [#allocation5], 0  ;;  %s165_s0 = inlined_call_operand.hbm [shape: f32[2], index: 0, kind: input, shape index: {}]   ;;  %s166_s1 = inlined_call_operand.hbm [shape: f32[1,2], index: 1, kind: input, shape index: {}]   ;;  %s167_s2 = inlined_call_operand.hbm [shape: f32[1,2], index: 2, kind: output, shape index: {}]  }
   0x1   :  { %8 = vsyncpa [#allocation3], 0 }
   0x2   :  { %9 = vsyncpa [#allocation4], 0  ;;  %s15_s11 = sshll.u32 %s165_s0, 4  ;;  %s24_s14 = sshll.u32 %s166_s1, 4  ;;  %s16_s11 = int_to_ptr.hbm [resolvable:$true] %s15_s11  ;;  %s25_s14 = int_to_ptr.hbm [resolvable:$true] %s24_s14 }
   0x3   :  { %s138_s15 = smov [#allocation2]   ;;  %s139_s16 = smov [#allocation6]  }
   0x4   :  { %18 = dma.hbm_to_smem %s16_s11, 16, %s138_s15, [#allocation5]  }
   0x5   :  { %s26_s17 = sshll.u32 %s139_s16, 4  ;;  %s27_s17 = int_to_ptr.vmem [resolvable:$true] %s26_s17 }
   0x6   :  { %29 = dma.hbm_to_vmem [thread:$0]  %s25_s14, 16, %s27_s17, [#allocation3]  }
   0x7   :  { %132 = dma.done.wait [#allocation5], 16  }
   0x8   :  { %133 = vsyncadd [#allocation5], 4294967280 }
   0x9   :  { %134 = dma.done.wait [#allocation3], 16  }
   0xa   :  { %135 = vsyncadd [#allocation3], 4294967280 }
   0xb   :  { %38 = sfence }
   0xc   :  { %s39_s18 = sld [smem:[#allocation2]]  ;;  %v41_v0 = vld [vmem:[#allocation6] sm:$0x1]  ;;  %s140_s0 = smov [#allocation7]   ;;  %vm48_vm0 = vcmask 8192  }
   0xd   :  { %s68_s19 = sld [smem:[#allocation2 + $0x1]]  ;;  %s55_s1 = sshll.u32 %s140_s0, 4  ;;  %s56_s1 = int_to_ptr.vmem [resolvable:$true] %s55_s1 }
   0xe   :  { %s57_s22 = sshll.u32 %s167_s2, 4  ;;  %s58_s22 = int_to_ptr.hbm [resolvable:$true] %s57_s22 }
  0x12   :  { %v42_v1 = vstv %s39_s18 }
  0x13   :  { %v43_v2 = vmul.f32 %v42_v1, %v41_v0  ;;  %v44_v3 = vstv %s68_s19 }
  0x15   :  { %v45_v4 = vadd.f32 %v44_v3, %v43_v2 }
  0x17   :  { %v46_v5 = vmul.f32 %v45_v4, %v42_v1 }
  0x19   :  { %v47_v6 = vadd.f32 %v46_v5, %v44_v3 }
  0x1b   :  { %49 = vst.msk [vmem:[#allocation7] sm:$0x1] %vm48_vm0, %v47_v6 }
  0x1c   :  { %60 = dma.vmem_to_hbm [thread:$0]  %s56_s1, 16, %s58_s22, [#allocation4]  }
  0x1d   :  { %136 = dma.done.wait [#allocation4], 16  }
  0x1e   :  { %137 = vsyncadd [#allocation4], 4294967280 }
  0x1f   :  { %65 = vsyncpa [#allocation3], 1 }
  0x20   :  { %66 = vsyncpa [#allocation4], 1 }
  0x21   :  { %67 = vsyncpa [#allocation5], 1 }

</bundles_post_ra>
